<compile_context>
chip_gen: v7x
topology: tpu7x:2x2x1
jax: 0.10.0
libtpu: 0.0.40
codegen_flags: <defaults>
</compile_context>

<pallas_src>
import math

import jax
import jax.numpy as jnp
from jax.experimental import pallas as pl
from jax.experimental.pallas import tpu as pltpu


def _round8(n):
    return ((n + 7) // 8) * 8


def _pack_params(params, head_names, in_channels):
    """Fold BN scale into conv weights, fuse all heads' first layers (they all read
    the same input x) into one weight block, and pack everything into a single
    bf16 weight slab + a single f32 shift slab (2 DMAs instead of 2*n_layers)."""
    K0 = max(int(params[n][0]['w'].shape[0]) for n in head_names)
    width0 = K0 * K0 * in_channels

    # 8-aligned row segment per head in the fused depth-0 block so the in-kernel
    # row split of the fused matmul result is a sublane-aligned value slice.
    seg_offs, off = [], 0
    for n in head_names:
        seg_offs.append(off)
        off += _round8(int(params[n][0]['w'].shape[3]))
    R0 = off

    w0 = jnp.zeros((R0, width0), jnp.float32)
    s0 = jnp.zeros((R0, 1), jnp.float32)
    heads, ks = [], []
    for i, n in enumerate(head_names):
        l0 = params[n][0]
        w = l0['w'] * l0['scale']                      # (K,K,cin,cout), scale per cout
        K, _, cin, cout = (int(d) for d in w.shape)
        assert cin == in_channels
        ks.append((K, cin))
        if K < K0:                                     # center-embed (e.g. 1x1 into 3x3)
            o = K0 // 2 - K // 2
            w = jnp.zeros((K0, K0, cin, cout), jnp.float32).at[o:o + K, o:o + K].set(w)
        wmat = jnp.transpose(w, (3, 0, 1, 2)).reshape(cout, width0)
        w0 = w0.at[seg_offs[i]:seg_offs[i] + cout].set(wmat)
        s0 = s0.at[seg_offs[i]:seg_offs[i] + cout].set(l0['shift'].reshape(cout, 1))
        heads.append(dict(seg=seg_offs[i], c0=cout, relu0=bool(l0['relu']),
                          c_out=int(params[n][-1]['w'].shape[3]), rest=[]))

    # remaining per-head layers appended after the fused depth-0 block
    w_blocks, s_blocks, widths = [w0], [s0], [width0]
    row = R0
    for i, n in enumerate(head_names):
        for layer in params[n][1:]:
            w = layer['w'] * layer['scale']
            K, _, cin, cout = (int(d) for d in w.shape)
            ks.append((K, cin))
            wcols = K * K * cin
            w_blocks.append(jnp.transpose(w, (3, 0, 1, 2)).reshape(cout, wcols))
            s_blocks.append(layer['shift'].reshape(cout, 1))
            heads[i]['rest'].append((row, K, cout, wcols, bool(layer['relu'])))
            row += cout
            widths.append(wcols)

    max_w = max(widths)
    w_slab = jnp.zeros((row, max_w), jnp.float32)
    r = 0
    for blk in w_blocks:
        w_slab = w_slab.at[r:r + blk.shape[0], 0:blk.shape[1]].set(blk)
        r += blk.shape[0]
    s_slab = jnp.concatenate(s_blocks, axis=0).astype(jnp.float32)
    return w_slab.astype(jnp.bfloat16), s_slab, heads, K0, width0, R0, ks


def _make_kernel(layout):
    H, W, HW, NB = layout['H'], layout['W'], layout['HW'], layout['NB']
    margin = layout['margin']
    K0, width0, R0 = layout['K0'], layout['width0'], layout['R0']
    heads = layout['heads']
    needed_ox = layout['needed_ox']
    has_pad = layout['has_pad']
    col_is_input = layout['col_is_input']
    n_heads = len(heads)

    def kernel(*refs):
        i = 0
        x_ref = refs[i]; i += 1
        w_ref = refs[i]; i += 1
        s_ref = refs[i]; i += 1
        col_ref = None
        if col_is_input:
            col_ref = refs[i]; i += 1
        out_refs = refs[i:i + n_heads]
        pad_ref = refs[i + n_heads] if has_pad else None

        # Zero ONLY the two halo margins (interior is fully rewritten each layer).
        # Done per grid step (cheap: 2 x (cpad, margin)) so megacore partitioning
        # stays correct -- vs. the old full pad zeroing per layer per head.
        if has_pad:
            zeros_m = jnp.zeros((pad_ref.shape[0], margin), jnp.float32)
            pad_ref[:, 0:margin] = zeros_m
            pad_ref[:, margin + HW:margin + HW + margin] = zeros_m

        # Hoisted row-wrap validity masks: one compare per distinct ox, reused by
        # every tap / layer / head / image. col built in-kernel (no DMA) when W is
        # a power of two.
        masks = {}
        if needed_ox:
            if col_is_input:
                col = col_ref[...]
            else:
                col = jax.lax.broadcasted_iota(jnp.int32, (1, HW), 1) & (W - 1)
            for ox in needed_ox:
                masks[ox] = (col >= -ox) if ox < 0 else (col < W - ox)

        def im2col(h, K):
            """Stack the K*K shifted taps of one image's (cin, HW) activation in
            vregs (no taps scratch; only one lane-aligned interior store)."""
            cin = h.shape[0]
            if K == 1:
                return h
            p = K // 2
            pad_ref[0:cin, margin:margin + HW] = h
            taps = []
            for dy in range(K):
                for dx in range(K):
                    s = (dy - p) * W + (dx - p)
                    tap = pad_ref[0:cin, margin + s:margin + s + HW]
                    if dx != p:                       # kill horizontal row wrap
                        tap = jnp.where(masks[dx - p], tap, 0.0)
                    taps.append(tap)
            return jnp.concatenate(taps, axis=0)       # (K*K*cin, HW) in vregs

        def make_rhs(h_list, K):
            """bf16 matmul RHS for the whole NB-image sub-batch (lane-concat)."""
            cols = [im2col(h, K) for h in h_list]
            rhs = cols[0] if len(cols) == 1 else jnp.concatenate(cols, axis=1)
            return rhs.astype(jnp.bfloat16)

        def matmul_shift(rhs, row, cout, wcols):
            w = w_ref[row:row + cout, 0:wcols]         # bf16 weight-slab slice
            y = jnp.dot(w, rhs, preferred_element_type=jnp.float32)
            return y + s_ref[row:row + cout, :]        # f32 shift/bias epilogue

        # ---- depth 0: every head's first conv reads x -> ONE fused MXU matmul ----
        y0 = matmul_shift(make_rhs([x_ref[b] for b in range(NB)], K0), 0, R0, width0)

        # ---- per-head epilogue, remaining layers, output stores ----
        for hi, hp in enumerate(heads):
            h = y0[hp['seg']:hp['seg'] + hp['c0'], :]  # 8-aligned row split
            if hp['relu0']:
                h = jnp.maximum(h, 0.0)
            for (row, K, cout, wcols, relu) in hp['rest']:
                if K == 1:
                    rhs = h.astype(jnp.bfloat16)
                else:
                    rhs = make_rhs([h[:, b * HW:(b + 1) * HW] for b in range(NB)], K)
                h = matmul_shift(rhs, row, cout, wcols)
                if relu:
                    h = jnp.maximum(h, 0.0)
            for b in range(NB):                        # lane-dense (cout, HW) stores
                out_refs[hi][b] = h[:, b * HW:(b + 1) * HW]

    return kernel


def ctnet_head_forward(params, x_nchw, images_per_step=None):
    """Matches CtnetHead.forward: dict of per-head NCHW outputs from a single
    fused Pallas call over all heads, layers and an NB-image sub-batch."""
    N, Cin, H, W = x_nchw.shape
    HW = H * W
    x = x_nchw.reshape(N, Cin, HW).astype(jnp.float32)   # flattened NCHW (free)

    head_names = list(params.keys())
    w_slab, s_slab, heads, K0, width0, R0, ks = _pack_params(params, head_names, Cin)

    # Images per grid step: amortize the ~0.35us per-step overhead while keeping
    # >= 2 parallel steps for v7x's two TensorCores whenever N >= 2.
    if images_per_step is None:
        NB = max(1, N // 2)
    else:
        NB = max(1, min(int(images_per_step), N))
    NB = min(NB, 8)
    while N % NB:
        NB -= 1
    grid = (N // NB,)

    # Halo pad scratch only if any K>1 conv exists; rows sized from the max input
    # channel count over all K>1 layers (not just the network input).
    k_gt1 = [(k, c) for (k, c) in ks if k > 1]
    has_pad = bool(k_gt1)
    needed_ox = sorted({ox for (k, _) in k_gt1
                        for ox in range(-(k // 2), k // 2 + 1) if ox != 0})
    if has_pad:
        kmax = max(k for (k, _) in k_gt1)
        cpad = max(c for (_, c) in k_gt1)
        margin = max(128, pl.cdiv((kmax // 2) * (W + 1), 128) * 128)
        scratch_shapes = [pltpu.VMEM((cpad, HW + 2 * margin), jnp.float32)]
    else:
        margin = 0
        scratch_shapes = []

    col_is_input = bool(needed_ox) and (W & (W - 1)) != 0   # iota&(W-1) needs pow2 W
    inputs = [x, w_slab, s_slab]
    in_specs = [
        pl.BlockSpec((NB, Cin, HW), lambda n: (n, 0, 0)),
        pl.BlockSpec(w_slab.shape, lambda n: (0, 0)),   # constant index -> resident
        pl.BlockSpec(s_slab.shape, lambda n: (0, 0)),
    ]
    if col_is_input:
        inputs.append((jnp.arange(HW, dtype=jnp.int32) % W).reshape(1, HW))
        in_specs.append(pl.BlockSpec((1, HW), lambda n: (0, 0)))

    out_shapes, out_specs = [], []
    for hp in heads:
        out_shapes.append(jax.ShapeDtypeStruct((N, hp['c_out'], HW), jnp.float32))
        out_specs.append(pl.BlockSpec((NB, hp['c_out'], HW), lambda n: (n, 0, 0)))

    layout = dict(H=H, W=W, HW=HW, NB=NB, margin=margin, K0=K0, width0=width0,
                  R0=R0, heads=heads, needed_ox=needed_ox, has_pad=has_pad,
                  col_is_input=col_is_input)

    outs = pl.pallas_call(
        _make_kernel(layout),
        grid=grid,
        out_shape=tuple(out_shapes),
        in_specs=in_specs,
        out_specs=tuple(out_specs),
        scratch_shapes=scratch_shapes,
        compiler_params=pltpu.CompilerParams(
            dimension_semantics=("parallel",),
            vmem_limit_bytes=32 * 1024 * 1024),
    )(*inputs)
    return {name: outs[i].reshape(N, -1, H, W) for i, name in enumerate(head_names)}


def init_ctnet_head_params(key, in_channels, heads_dict, final_kernel=1,
                           init_bias=-2.19):
    """Deterministic synthetic parameter init mirroring CtnetHead.__init__ shapes."""
    eps = 1e-5
    params = {}
    for name, cfg in heads_dict.items():
        out_ch = cfg['out_channels']
        num_conv = cfg['num_conv']
        layers = []
        for _ in range(num_conv - 1):                 # Conv3x3(no bias)+BN(eval)+ReLU
            key, kw = jax.random.split(key)
            fan_in = 3 * 3 * in_channels
            w = jax.random.normal(kw, (3, 3, in_channels, in_channels),
                                  jnp.float32) * math.sqrt(2.0 / fan_in)
            scale = jnp.full((in_channels,), 1.0 / math.sqrt(1.0 + eps), jnp.float32)
            shift = jnp.zeros((in_channels,), jnp.float32)
            layers.append(dict(w=w, scale=scale, shift=shift, relu=True))
        key, kw = jax.random.split(key)               # final conv (with bias)
        fan_in = final_kernel * final_kernel * in_channels
        w = jax.random.normal(kw, (final_kernel, final_kernel, in_channels, out_ch),
                              jnp.float32) * math.sqrt(2.0 / fan_in)
        bias_val = init_bias if 'hm' in name else 0.0
        layers.append(dict(w=w, scale=jnp.ones((out_ch,), jnp.float32),
                           shift=jnp.full((out_ch,), bias_val, jnp.float32),
                           relu=False))
        params[name] = layers
    return params


def _reference_forward(params, x_nchw):
    """Pure-JAX/XLA reference using the same BN-fold + bf16-operand rounding."""
    x = jnp.transpose(x_nchw, (0, 2, 3, 1)).astype(jnp.float32)   # NHWC
    ret = {}
    for name, layers in params.items():
        h = x
        for layer in layers:
            K = layer['w'].shape[0]
            w = (layer['w'] * layer['scale']).astype(jnp.bfloat16)
            h = jax.lax.conv_general_dilated(
                h.astype(jnp.bfloat16), w, (1, 1), [(K // 2, K // 2)] * 2,
                dimension_numbers=('NHWC', 'HWIO', 'NHWC'),
                preferred_element_type=jnp.float32)
            h = h + layer['shift']
            if layer['relu']:
                h = jnp.maximum(h, 0.0)
        ret[name] = jnp.transpose(h, (0, 3, 1, 2))
    return ret


if __name__ == "__main__":
    key = jax.random.PRNGKey(0)
    kx, kp = jax.random.split(key)

    in_channels = 4
    # heads_dict as used by CondLaneHead-style configs (small synthetic version)
    heads_dict = {
        'hm': {'out_channels': 1, 'num_conv': 2},      # 3x3+BN+ReLU -> 1x1 (bias=-2.19)
        'params': {'out_channels': 8, 'num_conv': 1},  # single 1x1 conv (bias=0)
    }

    # N=4 exercises both the sub-batching (NB=2 images per step) and the
    # 2-parallel-step grid.
    x = jax.random.normal(kx, (4, in_channels, 16, 16), jnp.float32)  # NCHW
    params = init_ctnet_head_params(kp, in_channels, heads_dict,
                                    final_kernel=1, init_bias=-2.19)

    fwd = jax.jit(lambda xx: ctnet_head_forward(params, xx))
    out = jax.block_until_ready(fwd(x))

    ref = _reference_forward(params, x)
    for name in heads_dict:
        assert out[name].shape == ref[name].shape, (name, out[name].shape)
        assert jnp.allclose(out[name], ref[name], atol=1e-3, rtol=1e-3), (
            name, float(jnp.max(jnp.abs(out[name] - ref[name]))))

    print("KERNEL_OK")
</pallas_src>

<mosaic_0001>
module attributes {stable_mosaic.version = 11 : i64} {
  func.func @kernel(%arg0: i32, %arg1: memref<2x4x256xf32, #tpu.memory_space<vmem>>, %arg2: memref<17x36xbf16, #tpu.memory_space<vmem>>, %arg3: memref<17x1xf32, #tpu.memory_space<vmem>>, %arg4: memref<2x1x256xf32, #tpu.memory_space<vmem>>, %arg5: memref<2x8x256xf32, #tpu.memory_space<vmem>>, %arg6: memref<4x512xf32, #tpu.memory_space<vmem>>) attributes {dimension_semantics = [#tpu.dimension_semantics<parallel>], iteration_bounds = array<i64: 2>, scalar_prefetch = 0 : i64, scratch_operands = 1 : i64, tpu.core_type = #tpu.core_type<tc>, window_params = [{transform_indices = @transform_0, window_bounds = array<i64: 2, 4, 256>}, {pipeline_mode = #tpu.pipeline_mode<synchronous>, transform_indices = @transform_1, window_bounds = array<i64: 17, 36>}, {pipeline_mode = #tpu.pipeline_mode<synchronous>, transform_indices = @transform_2, window_bounds = array<i64: 17, 1>}, {transform_indices = @transform_3, window_bounds = array<i64: 2, 1, 256>}, {transform_indices = @transform_4, window_bounds = array<i64: 2, 8, 256>}]} {
    %cst = arith.constant 0.000000e+00 : f32
    %0 = vector.broadcast %cst : f32 to vector<4x128xf32>
    %c0 = arith.constant 0 : index
    %c0_0 = arith.constant 0 : index
    %1 = vector.load %arg6[%c0, %c0_0] : memref<4x512xf32, #tpu.memory_space<vmem>>, vector<4x128xf32>
    tpu.vector_store %arg6[%c0, %c0_0], %0 {strides = array<i32>} : memref<4x512xf32, #tpu.memory_space<vmem>>, vector<4x128xf32>,
    %c0_1 = arith.constant 0 : index
    %c384 = arith.constant 384 : index
    %2 = vector.load %arg6[%c0_1, %c384] : memref<4x512xf32, #tpu.memory_space<vmem>>, vector<4x128xf32>
    tpu.vector_store %arg6[%c0_1, %c384], %0 {strides = array<i32>} : memref<4x512xf32, #tpu.memory_space<vmem>>, vector<4x128xf32>,
    %3 = tpu.iota {dimensions = array<i32: 1>} : vector<1x256xi32>
    %c15_i32 = arith.constant 15 : i32
    %4 = vector.broadcast %c15_i32 : i32 to vector<1x256xi32>
    %5 = arith.andi %3, %4 : vector<1x256xi32>
    %c1_i32 = arith.constant 1 : i32
    %6 = vector.broadcast %c1_i32 : i32 to vector<1x256xi32>
    %7 = arith.cmpi sge, %5, %6 : vector<1x256xi32>
    %c15_i32_2 = arith.constant 15 : i32
    %8 = vector.broadcast %c15_i32_2 : i32 to vector<1x256xi32>
    %9 = arith.cmpi slt, %5, %8 : vector<1x256xi32>
    %c0_3 = arith.constant 0 : index
    %c0_4 = arith.constant 0 : index
    %c0_5 = arith.constant 0 : index
    %10 = vector.load %arg1[%c0_3, %c0_4, %c0_5] : memref<2x4x256xf32, #tpu.memory_space<vmem>>, vector<1x4x256xf32>
    %11 = vector.shape_cast %10 : vector<1x4x256xf32> to vector<4x256xf32>
    %c1 = arith.constant 1 : index
    %c0_6 = arith.constant 0 : index
    %c0_7 = arith.constant 0 : index
    %12 = vector.load %arg1[%c1, %c0_6, %c0_7] : memref<2x4x256xf32, #tpu.memory_space<vmem>>, vector<1x4x256xf32>
    %13 = vector.shape_cast %12 : vector<1x4x256xf32> to vector<4x256xf32>
    %c0_8 = arith.constant 0 : index
    %c128 = arith.constant 128 : index
    %14 = vector.load %arg6[%c0_8, %c128] : memref<4x512xf32, #tpu.memory_space<vmem>>, vector<4x256xf32>
    tpu.vector_store %arg6[%c0_8, %c128], %11 {strides = array<i32>} : memref<4x512xf32, #tpu.memory_space<vmem>>, vector<4x256xf32>,
    %c0_9 = arith.constant 0 : index
    %c111 = arith.constant 111 : index
    %15 = vector.load %arg6[%c0_9, %c111] : memref<4x512xf32, #tpu.memory_space<vmem>>, vector<4x256xf32>
    %cst_10 = arith.constant 0.000000e+00 : f32
    %16 = vector.shape_cast %7 : vector<1x256xi1> to vector<1x256xi1>
    %17 = vector.broadcast %16 : vector<1x256xi1> to vector<4x256xi1>
    %18 = vector.broadcast %cst_10 : f32 to vector<4x256xf32>
    %19 = arith.select %17, %15, %18 : vector<4x256xi1>, vector<4x256xf32>
    %c0_11 = arith.constant 0 : index
    %c112 = arith.constant 112 : index
    %20 = vector.load %arg6[%c0_11, %c112] : memref<4x512xf32, #tpu.memory_space<vmem>>, vector<4x256xf32>
    %c0_12 = arith.constant 0 : index
    %c113 = arith.constant 113 : index
    %21 = vector.load %arg6[%c0_12, %c113] : memref<4x512xf32, #tpu.memory_space<vmem>>, vector<4x256xf32>
    %cst_13 = arith.constant 0.000000e+00 : f32
    %22 = vector.shape_cast %9 : vector<1x256xi1> to vector<1x256xi1>
    %23 = vector.broadcast %22 : vector<1x256xi1> to vector<4x256xi1>
    %24 = vector.broadcast %cst_13 : f32 to vector<4x256xf32>
    %25 = arith.select %23, %21, %24 : vector<4x256xi1>, vector<4x256xf32>
    %c0_14 = arith.constant 0 : index
    %c127 = arith.constant 127 : index
    %26 = vector.load %arg6[%c0_14, %c127] : memref<4x512xf32, #tpu.memory_space<vmem>>, vector<4x256xf32>
    %cst_15 = arith.constant 0.000000e+00 : f32
    %27 = vector.shape_cast %7 : vector<1x256xi1> to vector<1x256xi1>
    %28 = vector.broadcast %27 : vector<1x256xi1> to vector<4x256xi1>
    %29 = vector.broadcast %cst_15 : f32 to vector<4x256xf32>
    %30 = arith.select %28, %26, %29 : vector<4x256xi1>, vector<4x256xf32>
    %c0_16 = arith.constant 0 : index
    %c128_17 = arith.constant 128 : index
    %31 = vector.load %arg6[%c0_16, %c128_17] : memref<4x512xf32, #tpu.memory_space<vmem>>, vector<4x256xf32>
    %c0_18 = arith.constant 0 : index
    %c129 = arith.constant 129 : index
    %32 = vector.load %arg6[%c0_18, %c129] : memref<4x512xf32, #tpu.memory_space<vmem>>, vector<4x256xf32>
    %cst_19 = arith.constant 0.000000e+00 : f32
    %33 = vector.shape_cast %9 : vector<1x256xi1> to vector<1x256xi1>
    %34 = vector.broadcast %33 : vector<1x256xi1> to vector<4x256xi1>
    %35 = vector.broadcast %cst_19 : f32 to vector<4x256xf32>
    %36 = arith.select %34, %32, %35 : vector<4x256xi1>, vector<4x256xf32>
    %c0_20 = arith.constant 0 : index
    %c143 = arith.constant 143 : index
    %37 = vector.load %arg6[%c0_20, %c143] : memref<4x512xf32, #tpu.memory_space<vmem>>, vector<4x256xf32>
    %cst_21 = arith.constant 0.000000e+00 : f32
    %38 = vector.shape_cast %7 : vector<1x256xi1> to vector<1x256xi1>
    %39 = vector.broadcast %38 : vector<1x256xi1> to vector<4x256xi1>
    %40 = vector.broadcast %cst_21 : f32 to vector<4x256xf32>
    %41 = arith.select %39, %37, %40 : vector<4x256xi1>, vector<4x256xf32>
    %c0_22 = arith.constant 0 : index
    %c144 = arith.constant 144 : index
    %42 = vector.load %arg6[%c0_22, %c144] : memref<4x512xf32, #tpu.memory_space<vmem>>, vector<4x256xf32>
    %c0_23 = arith.constant 0 : index
    %c145 = arith.constant 145 : index
    %43 = vector.load %arg6[%c0_23, %c145] : memref<4x512xf32, #tpu.memory_space<vmem>>, vector<4x256xf32>
    %cst_24 = arith.constant 0.000000e+00 : f32
    %44 = vector.shape_cast %9 : vector<1x256xi1> to vector<1x256xi1>
    %45 = vector.broadcast %44 : vector<1x256xi1> to vector<4x256xi1>
    %46 = vector.broadcast %cst_24 : f32 to vector<4x256xf32>
    %47 = arith.select %45, %43, %46 : vector<4x256xi1>, vector<4x256xf32>
    %48 = tpu.concatenate %19, %20, %25, %30, %31, %36, %41, %42, %47 in 0 : vector<4x256xf32>, vector<4x256xf32>, vector<4x256xf32>, vector<4x256xf32>, vector<4x256xf32>, vector<4x256xf32>, vector<4x256xf32>, vector<4x256xf32>, vector<4x256xf32> -> vector<36x256xf32>
    %c0_25 = arith.constant 0 : index
    %c128_26 = arith.constant 128 : index
    %49 = vector.load %arg6[%c0_25, %c128_26] : memref<4x512xf32, #tpu.memory_space<vmem>>, vector<4x256xf32>
    tpu.vector_store %arg6[%c0_25, %c128_26], %13 {strides = array<i32>} : memref<4x512xf32, #tpu.memory_space<vmem>>, vector<4x256xf32>,
    %c0_27 = arith.constant 0 : index
    %c111_28 = arith.constant 111 : index
    %50 = vector.load %arg6[%c0_27, %c111_28] : memref<4x512xf32, #tpu.memory_space<vmem>>, vector<4x256xf32>
    %cst_29 = arith.constant 0.000000e+00 : f32
    %51 = vector.shape_cast %7 : vector<1x256xi1> to vector<1x256xi1>
    %52 = vector.broadcast %51 : vector<1x256xi1> to vector<4x256xi1>
    %53 = vector.broadcast %cst_29 : f32 to vector<4x256xf32>
    %54 = arith.select %52, %50, %53 : vector<4x256xi1>, vector<4x256xf32>
    %c0_30 = arith.constant 0 : index
    %c112_31 = arith.constant 112 : index
    %55 = vector.load %arg6[%c0_30, %c112_31] : memref<4x512xf32, #tpu.memory_space<vmem>>, vector<4x256xf32>
    %c0_32 = arith.constant 0 : index
    %c113_33 = arith.constant 113 : index
    %56 = vector.load %arg6[%c0_32, %c113_33] : memref<4x512xf32, #tpu.memory_space<vmem>>, vector<4x256xf32>
    %cst_34 = arith.constant 0.000000e+00 : f32
    %57 = vector.shape_cast %9 : vector<1x256xi1> to vector<1x256xi1>
    %58 = vector.broadcast %57 : vector<1x256xi1> to vector<4x256xi1>
    %59 = vector.broadcast %cst_34 : f32 to vector<4x256xf32>
    %60 = arith.select %58, %56, %59 : vector<4x256xi1>, vector<4x256xf32>
    %c0_35 = arith.constant 0 : index
    %c127_36 = arith.constant 127 : index
    %61 = vector.load %arg6[%c0_35, %c127_36] : memref<4x512xf32, #tpu.memory_space<vmem>>, vector<4x256xf32>
    %cst_37 = arith.constant 0.000000e+00 : f32
    %62 = vector.shape_cast %7 : vector<1x256xi1> to vector<1x256xi1>
    %63 = vector.broadcast %62 : vector<1x256xi1> to vector<4x256xi1>
    %64 = vector.broadcast %cst_37 : f32 to vector<4x256xf32>
    %65 = arith.select %63, %61, %64 : vector<4x256xi1>, vector<4x256xf32>
    %c0_38 = arith.constant 0 : index
    %c128_39 = arith.constant 128 : index
    %66 = vector.load %arg6[%c0_38, %c128_39] : memref<4x512xf32, #tpu.memory_space<vmem>>, vector<4x256xf32>
    %c0_40 = arith.constant 0 : index
    %c129_41 = arith.constant 129 : index
    %67 = vector.load %arg6[%c0_40, %c129_41] : memref<4x512xf32, #tpu.memory_space<vmem>>, vector<4x256xf32>
    %cst_42 = arith.constant 0.000000e+00 : f32
    %68 = vector.shape_cast %9 : vector<1x256xi1> to vector<1x256xi1>
    %69 = vector.broadcast %68 : vector<1x256xi1> to vector<4x256xi1>
    %70 = vector.broadcast %cst_42 : f32 to vector<4x256xf32>
    %71 = arith.select %69, %67, %70 : vector<4x256xi1>, vector<4x256xf32>
    %c0_43 = arith.constant 0 : index
    %c143_44 = arith.constant 143 : index
    %72 = vector.load %arg6[%c0_43, %c143_44] : memref<4x512xf32, #tpu.memory_space<vmem>>, vector<4x256xf32>
    %cst_45 = arith.constant 0.000000e+00 : f32
    %73 = vector.shape_cast %7 : vector<1x256xi1> to vector<1x256xi1>
    %74 = vector.broadcast %73 : vector<1x256xi1> to vector<4x256xi1>
    %75 = vector.broadcast %cst_45 : f32 to vector<4x256xf32>
    %76 = arith.select %74, %72, %75 : vector<4x256xi1>, vector<4x256xf32>
    %c0_46 = arith.constant 0 : index
    %c144_47 = arith.constant 144 : index
    %77 = vector.load %arg6[%c0_46, %c144_47] : memref<4x512xf32, #tpu.memory_space<vmem>>, vector<4x256xf32>
    %c0_48 = arith.constant 0 : index
    %c145_49 = arith.constant 145 : index
    %78 = vector.load %arg6[%c0_48, %c145_49] : memref<4x512xf32, #tpu.memory_space<vmem>>, vector<4x256xf32>
    %cst_50 = arith.constant 0.000000e+00 : f32
    %79 = vector.shape_cast %9 : vector<1x256xi1> to vector<1x256xi1>
    %80 = vector.broadcast %79 : vector<1x256xi1> to vector<4x256xi1>
    %81 = vector.broadcast %cst_50 : f32 to vector<4x256xf32>
    %82 = arith.select %80, %78, %81 : vector<4x256xi1>, vector<4x256xf32>
    %83 = tpu.concatenate %54, %55, %60, %65, %66, %71, %76, %77, %82 in 0 : vector<4x256xf32>, vector<4x256xf32>, vector<4x256xf32>, vector<4x256xf32>, vector<4x256xf32>, vector<4x256xf32>, vector<4x256xf32>, vector<4x256xf32>, vector<4x256xf32> -> vector<36x256xf32>
    %84 = tpu.concatenate %48, %83 in 1 : vector<36x256xf32>, vector<36x256xf32> -> vector<36x512xf32>
    %85 = arith.truncf %84 : vector<36x512xf32> to vector<36x512xbf16>
    %c0_51 = arith.constant 0 : index
    %c0_52 = arith.constant 0 : index
    %86 = vector.load %arg2[%c0_51, %c0_52] : memref<17x36xbf16, #tpu.memory_space<vmem>>, vector<16x36xbf16>
    %cst_53 = arith.constant dense<0.000000e+00> : vector<16x512xf32>
    %87 = tpu.matmul %86, %85, %cst_53 {dimension_numbers = #tpu.dot_dimension_numbers<[1], [0], [0], [1], [0, 0, 1, 1], [], []>} : vector<16x36xbf16>, vector<36x512xbf16>, vector<16x512xf32> -> vector<16x512xf32>
    %c0_54 = arith.constant 0 : index
    %c0_55 = arith.constant 0 : index
    %88 = vector.load %arg3[%c0_54, %c0_55] : memref<17x1xf32, #tpu.memory_space<vmem>>, vector<16x1xf32>
    %89 = vector.broadcast %88 : vector<16x1xf32> to vector<16x512xf32>
    %90 = arith.addf %87, %89 : vector<16x512xf32>
    %91 = vector.extract_strided_slice %90 {offsets = [0, 0], sizes = [4, 512], strides = [1, 1]} : vector<16x512xf32> to vector<4x512xf32>
    %cst_56 = arith.constant 0.000000e+00 : f32
    %92 = vector.broadcast %cst_56 : f32 to vector<4x512xf32>
    %93 = arith.maximumf %91, %92 : vector<4x512xf32>
    %94 = arith.truncf %93 : vector<4x512xf32> to vector<4x512xbf16>
    %c16 = arith.constant 16 : index
    %c0_57 = arith.constant 0 : index
    %95 = vector.load %arg2[%c16, %c0_57] : memref<17x36xbf16, #tpu.memory_space<vmem>>, vector<1x4xbf16>
    %cst_58 = arith.constant dense<0.000000e+00> : vector<1x512xf32>
    %96 = tpu.matmul %95, %94, %cst_58 {dimension_numbers = #tpu.dot_dimension_numbers<[1], [0], [0], [1], [0, 0, 1, 1], [], []>} : vector<1x4xbf16>, vector<4x512xbf16>, vector<1x512xf32> -> vector<1x512xf32>
    %c16_59 = arith.constant 16 : index
    %c0_60 = arith.constant 0 : index
    %97 = vector.load %arg3[%c16_59, %c0_60] : memref<17x1xf32, #tpu.memory_space<vmem>>, vector<1x1xf32>
    %98 = vector.broadcast %97 : vector<1x1xf32> to vector<1x512xf32>
    %99 = arith.addf %96, %98 : vector<1x512xf32>
    %100 = vector.extract_strided_slice %99 {offsets = [0, 0], sizes = [1, 256], strides = [1, 1]} : vector<1x512xf32> to vector<1x256xf32>
    %c0_61 = arith.constant 0 : index
    %c0_62 = arith.constant 0 : index
    %c0_63 = arith.constant 0 : index
    %101 = vector.load %arg4[%c0_61, %c0_62, %c0_63] : memref<2x1x256xf32, #tpu.memory_space<vmem>>, vector<1x1x256xf32>
    %102 = vector.shape_cast %101 : vector<1x1x256xf32> to vector<1x256xf32>
    %103 = vector.shape_cast %100 : vector<1x256xf32> to vector<1x1x256xf32>
    tpu.vector_store %arg4[%c0_61, %c0_62, %c0_63], %103 {strides = array<i32>} : memref<2x1x256xf32, #tpu.memory_space<vmem>>, vector<1x1x256xf32>,
    %104 = vector.extract_strided_slice %99 {offsets = [0, 256], sizes = [1, 256], strides = [1, 1]} : vector<1x512xf32> to vector<1x256xf32>
    %c1_64 = arith.constant 1 : index
    %c0_65 = arith.constant 0 : index
    %c0_66 = arith.constant 0 : index
    %105 = vector.load %arg4[%c1_64, %c0_65, %c0_66] : memref<2x1x256xf32, #tpu.memory_space<vmem>>, vector<1x1x256xf32>
    %106 = vector.shape_cast %105 : vector<1x1x256xf32> to vector<1x256xf32>
    %107 = vector.shape_cast %104 : vector<1x256xf32> to vector<1x1x256xf32>
    tpu.vector_store %arg4[%c1_64, %c0_65, %c0_66], %107 {strides = array<i32>} : memref<2x1x256xf32, #tpu.memory_space<vmem>>, vector<1x1x256xf32>,
    %108 = vector.extract_strided_slice %90 {offsets = [8, 0], sizes = [8, 512], strides = [1, 1]} : vector<16x512xf32> to vector<8x512xf32>
    %109 = vector.extract_strided_slice %108 {offsets = [0, 0], sizes = [8, 256], strides = [1, 1]} : vector<8x512xf32> to vector<8x256xf32>
    %c0_67 = arith.constant 0 : index
    %c0_68 = arith.constant 0 : index
    %c0_69 = arith.constant 0 : index
    %110 = vector.load %arg5[%c0_67, %c0_68, %c0_69] : memref<2x8x256xf32, #tpu.memory_space<vmem>>, vector<1x8x256xf32>
    %111 = vector.shape_cast %110 : vector<1x8x256xf32> to vector<8x256xf32>
    %112 = vector.shape_cast %109 : vector<8x256xf32> to vector<1x8x256xf32>
    tpu.vector_store %arg5[%c0_67, %c0_68, %c0_69], %112 {strides = array<i32>} : memref<2x8x256xf32, #tpu.memory_space<vmem>>, vector<1x8x256xf32>,
    %113 = vector.extract_strided_slice %108 {offsets = [0, 256], sizes = [8, 256], strides = [1, 1]} : vector<8x512xf32> to vector<8x256xf32>
    %c1_70 = arith.constant 1 : index
    %c0_71 = arith.constant 0 : index
    %c0_72 = arith.constant 0 : index
    %114 = vector.load %arg5[%c1_70, %c0_71, %c0_72] : memref<2x8x256xf32, #tpu.memory_space<vmem>>, vector<1x8x256xf32>
    %115 = vector.shape_cast %114 : vector<1x8x256xf32> to vector<8x256xf32>
    %116 = vector.shape_cast %113 : vector<8x256xf32> to vector<1x8x256xf32>
    tpu.vector_store %arg5[%c1_70, %c0_71, %c0_72], %116 {strides = array<i32>} : memref<2x8x256xf32, #tpu.memory_space<vmem>>, vector<1x8x256xf32>,
    return
  }
  func.func @transform_0(%arg0: i32) -> (i32, i32, i32) {
    %c0_i32 = arith.constant 0 : i32
    %c0_i32_0 = arith.constant 0 : i32
    %c0_i32_1 = arith.constant 0 : i32
    return %arg0, %c0_i32, %c0_i32_0 : i32, i32, i32
  }
  func.func @transform_1(%arg0: i32) -> (i32, i32) {
    %c0_i32 = arith.constant 0 : i32
    %c0_i32_0 = arith.constant 0 : i32
    %c0_i32_1 = arith.constant 0 : i32
    return %c0_i32, %c0_i32_0 : i32, i32
  }
  func.func @transform_2(%arg0: i32) -> (i32, i32) {
    %c0_i32 = arith.constant 0 : i32
    %c0_i32_0 = arith.constant 0 : i32
    %c0_i32_1 = arith.constant 0 : i32
    return %c0_i32, %c0_i32_0 : i32, i32
  }
  func.func @transform_3(%arg0: i32) -> (i32, i32, i32) {
    %c0_i32 = arith.constant 0 : i32
    %c0_i32_0 = arith.constant 0 : i32
    %c0_i32_1 = arith.constant 0 : i32
    return %arg0, %c0_i32, %c0_i32_0 : i32, i32, i32
  }
  func.func @transform_4(%arg0: i32) -> (i32, i32, i32) {
    %c0_i32 = arith.constant 0 : i32
    %c0_i32_0 = arith.constant 0 : i32
    %c0_i32_1 = arith.constant 0 : i32
    return %arg0, %c0_i32, %c0_i32_0 : i32, i32, i32
  }
}

</mosaic_0001>

<bundles_post_ra>
// kernel: _lambda_.1
= control target key start
LH: loop header
LB: loop body
LE: loop exit
PB: predicated region body
PF: predicated region fallthrough
CT: control target
= control target key end

     0   :  { %s1127_s15 = smov 0   ;;  %s1347_s0 = inlined_call_operand.vmem [shape: f32[4,4,256], index: 0, kind: input, shape index: {}]   ;;  %s1348_s1 = inlined_call_operand.vmem [shape: bf16[17,36], index: 1, kind: input, shape index: {}]   ;;  %s1349_s2 = inlined_call_operand.vmem [shape: f32[17,1], index: 2, kind: input, shape index: {}]   ;;  %s1350_s3 = inlined_call_operand.vmem [shape: f32[4,1,256], index: 3, kind: output, shape index: {0}]   ;;  %s1351_s4 = inlined_call_operand.vmem [shape: f32[4,8,256], index: 4, kind: output, shape index: {1}]  }
   0x1 LB: > { %s901_s16 = sadd.s32 4294967295, %s1089_s15   ;;  %p905_p0 = scmp.ge.s32.totalorder %s1089_s15, 1  ;;  %s1089_s15 = sphi %s1127_s15, %s15_s15  }
   0x2   : > { %p167_p1 = scmp.lt.s32.totalorder %s1089_s15, 3 }
   0x4   : > { %p168_p2 = pnand %p905_p0, %p167_p1 }
   0x5   : > { %s906_s17 = sshll.u32 (!%p168_p2), %s901_s16, 1  ;;  %v1091_v0 = vmov (!%p168_p2), 0.0   ;;  %s1092_s22 = smov (!%p168_p2), 17   ;;  %v1100_v36 = vmov (!%p168_p2), 0   ;;  %v657_v37 = vld [vmem:[%s1349_s2 + $0x10] sm:$0x1] (!%p168_p2)  ;;  %v223_v40 = vlaneseq (!%p168_p2) }
   0x6   : > { %171 = sbr.rel (%p168_p2) target bundleno = 644 (0x284), region = 32  ;;  %p201_p3 = scmp.lt.s32.totalorder (!%p168_p2), %s906_s17, 3  ;;  %221 = vst [vmem:[#allocation2] sm:$0xf] (!%p168_p2), %v1091_v0  ;;  %222 = vst [vmem:[#allocation2 + $0xc] sm:$0xf] (!%p168_p2), %v1091_v0  ;;  %594 = vmatprep.mubr.bf16.mxu0 (!%p168_p2), %v1100_v36  ;;  %637 = vmatprep.mubr.bf16.mxu1 (!%p168_p2), %v1100_v36 }
   0x7   : > { %s1093_s23 = smov (!%p168_p2), 1   ;;  %s1094_s24 = smov (!%p168_p2), 16   ;;  %1071 = vset.pattern.permute.xlu1 (!%p168_p2), %v1100_v36  ;;  %1070 = vset.pattern.permute.xlu0 (!%p168_p2), %v1100_v36  ;;  %v528_v38 = vld [vmem:[%s1349_s2] sm:$0xff] (!%p168_p2)  ;;  %v529_v39 = vld [vmem:[%s1349_s2 + $0x8] sm:$0xff] (!%p168_p2)  ;;  %v224_v41 = vand.u32 (!%p168_p2), 127, %v223_v40  ;;  %vm281_vm0 = vcmask (!%p168_p2), 7168  }
   0x8   : > { %s1095_s25 = smov (!%p168_p2), 15   ;;  %s1096_s26 = smov (!%p168_p2), 127   ;;  %vm251_vm2 = vcmask (!%p168_p2), 138240   ;;  %vm268_vm4 = vcmask (!%p168_p2), 121856   ;;  %vm341_vm5 = vcmask (!%p168_p2), 130048   ;;  %vm374_vm6 = vcmask (!%p168_p2), 1043456  }
   0x9   : > { %s1097_s27 = smov (!%p168_p2), 113   ;;  %s1098_s28 = smov (!%p168_p2), 112   ;;  %v225_v42 = vadd.s32 (!%p168_p2), 128, %v224_v41  ;;  %vm300_vm7 = vcmask (!%p168_p2), 1039360   ;;  %vm313_vm10 = vcmask (!%p168_p2), 924672   ;;  %vm369_vm11 = vcmask (!%p168_p2), 916480  }
   0xa   : > { %s1099_s29 = smov (!%p168_p2), 111   ;;  %vm326_vm12 = vcmask (!%p168_p2), 908288   ;;  %vm549_vm13 = vcmask (!%p168_p2), 1041408   ;;  %v1082_v52 = vld [vmem:[%s1348_s1] sm:$0xff] (!%p168_p2)   ;;  %vm545_vm14 = vcmask (!%p168_p2), 293888   ;;  %vm663_vm15 = vcmask (!%p168_p2), 31744  }
   0xb   : > { %v227_v43 = vand.u32 (!%p168_p2), 15, %v225_v42 }
   0xd   : > { %s1361_s17 = smov (!%p201_p3, %s906_s17), 3  ;;  %v290_v10 = vld [vmem:[#allocation2 + $0xc] sm:$0xf]  ;;  %vm1185_vm1 = vcmp.ge.s32.totalorder %v227_v43, 1  ;;  %vm1192_vm3 = vcmp.lt.s32.totalorder %v227_v43, 15 }
   0xe   : > { %s929_s18 = sshll.u32 %s1361_s17, 3  ;;  %v427_v24 = vld [vmem:[#allocation2 + $0xc] sm:$0xf]  ;;  %v362_v26 = vcombine.low %v290_v10, %v290_v10  ;;  %s930_s12 = sshll.u32 %s1361_s17, 4 }
   0xf   : > { %s205_s21 = scalar_lea.vmem %s1347_s0, %s929_s18  ;;  %v495_v31 = vcombine.low %v427_v24, %v427_v24  ;;  %s218_s16 = scalar_lea.vmem %s1351_s4, %s930_s12 }
  0x10   : > { %v1141_v1 = vld [vmem:[%s205_s21] sm:$0xff]  ;;  %v1144_v2 = vld [vmem:[%s205_s21 + $0x8] sm:$0xff]  ;;  %s910_s20 = sshll.u32 %s1361_s17, 1 }
  0x11   : > { %235 = vst [vmem:[#allocation2 + $0x4] sm:$0xff] %v1141_v1  ;;  %v1149_v9 = vcombine.high %v1141_v1, %v1141_v1  ;;  %v1154_v19 = vcombine.high %v1144_v2, %v1144_v2  ;;  %v1015_v25 = vpack.i.bf16 %v1144_v2, %v427_v24  ;;  %v1035_v27 = vpack.i.bf16 %v362_v26, %v1141_v1 }
  0x12   : > { %v361_v28 = vcombine.low %v1141_v1, %v1141_v1  ;;  %v494_v30 = vcombine.low %v1144_v2, %v1144_v2  ;;  %v1060_v35 = vpack.i.bf16 %v1144_v2, %v290_v10 }
  0x13   : > { %v970_v14 = vpack.i.bf16 %v290_v10, %v1149_v9  ;;  %v1020_v22 = vpack.i.bf16 %v1154_v19, %v1141_v1  ;;  %v1055_v32 = vpack.i.bf16 %v1149_v9, %v1141_v1  ;;  %v1065_v34 = vpack.i.bf16 %v427_v24, %v1154_v19 }
  0x14   : > { %v1045_v29 = vpack.i.bf16 %v1144_v2, %v361_v28  ;;  %v1050_v33 = vpack.i.bf16 %v494_v30, %v495_v31 }
  0x18   : > { %v236_v3 = vld [vmem:[#allocation2] sm:$0xff]  ;;  %v237_v4 = vld [vmem:[#allocation2 + $0x8] sm:$0xf] }
  0x19   : > { %v244_v5 = vcombine.high %v236_v3, %v236_v3  ;;  %383 = vst [vmem:[#allocation2 + $0x4] sm:$0xff] %v1144_v2  ;;  %v334_v6 = vcombine.low %v237_v4, %v237_v4  ;;  %v333_v15 = vcombine.low %v236_v3, %v236_v3 }
  0x1b   : > { %v955_v7 = vpack.i.bf16 %v237_v4, %v244_v5  ;;  %v965_v8 = vpack.i.bf16 %v334_v6, %v236_v3 }
  0x1d   : > { %956 = vrot.lane.b32.xlu1 %v955_v7, %s1092_s22  ;;  %951 = vrot.lane.b32.xlu0 %v955_v7, %s1093_s23 }
  0x20   : > { %v384_v11 = vld [vmem:[#allocation2] sm:$0xff]  ;;  %v385_v12 = vld [vmem:[#allocation2 + $0x8] sm:$0xf] }
  0x21   : > { %966 = vrot.lane.b32.xlu1 %v965_v8, %s1094_s24  ;;  %961 = vrot.lane.b32.xlu0 %v955_v7, %s1095_s25  ;;  %v975_v13 = vpack.i.bf16 %v384_v11, %v385_v12  ;;  %v388_v16 = vcombine.high %v384_v11, %v384_v11  ;;  %v990_v17 = vpack.i.bf16 %v384_v11, %v333_v15 }
  0x22   : > { %v467_v20 = vcombine.low %v384_v11, %v384_v11  ;;  %v468_v21 = vcombine.low %v385_v12, %v385_v12 }
  0x23   : > { %v995_v18 = vpack.i.bf16 %v388_v16, %v236_v3 }
  0x24   : > { %v1010_v23 = vpack.i.bf16 %v467_v20, %v468_v21 }
  0x25   : > { %976 = vrot.lane.b32.xlu1 %v975_v13, %s1093_s23  ;;  %971 = vrot.lane.b32.xlu0 %v970_v14, %s1096_s26 }
  0x29   : > { %986 = vrot.lane.b32.xlu1 %v975_v13, %s1095_s25  ;;  %981 = vrot.lane.b32.xlu0 %v975_v13, %s1092_s22 }
  0x2d   : > { %991 = vrot.lane.b32.xlu1 %v990_v17, %s1094_s24  ;;  %996 = vrot.lane.b32.xlu0 %v995_v18, %s1093_s23  ;;  %s211_s23 = scalar_lea.vmem %s1350_s3, %s910_s20 }
  0x31   : > { %1001 = vrot.lane.b32.xlu1 %v995_v18, %s1092_s22  ;;  %1006 = vrot.lane.b32.xlu0 %v995_v18, %s1095_s25 }
  0x35   : > { %1021 = vrot.lane.b32.xlu1 %v1020_v22, %s1096_s26  ;;  %1011 = vrot.lane.b32.xlu0 %v1010_v23, %s1094_s24 }
  0x39   : > { %1026 = vrot.lane.b32.xlu1 %v970_v14, %s1097_s27  ;;  %1016 = vrot.lane.b32.xlu0 %v1015_v25, %s1096_s26  ;;  %v226_v14 = vand.u32 15, %v224_v41 }
  0x3b   : > { %vm1218_vm8 = vcmp.ge.s32.totalorder %v226_v14, 1  ;;  %vm1226_vm9 = vcmp.lt.s32.totalorder %v226_v14, 15 }
  0x3d   : > { %1036 = vrot.lane.b32.xlu1 %v1035_v27, %s1098_s28  ;;  %1031 = vrot.lane.b32.xlu0 %v1020_v22, %s1097_s27 }
  0x41   : > { %1046 = vrot.lane.b32.xlu1 %v1045_v29, %s1098_s28  ;;  %1041 = vrot.lane.b32.xlu0 %v1015_v25, %s1097_s27 }
  0x45   : > { %1056 = vrot.lane.b32.xlu1 %v1055_v32, %s1099_s29  ;;  %1051 = vrot.lane.b32.xlu0 %v1050_v33, %s1098_s28 }
  0x49   : > { %1066 = vrot.lane.b32.xlu1 %v1065_v34, %s1099_s29  ;;  %1061 = vrot.lane.b32.xlu0 %v1060_v35, %s1099_s29 }
  0x4d   : > { %660 = vperm.xlu1 %1071, %v657_v37   ;;  %532 = vperm.xlu0 %1070, %v528_v38  }
  0x51   : > { %537 = vperm.xlu1 %1071, %v529_v39  }
  0x8f   : > { %v1183_v44 = vpop.permute.xlu1 %956  ;;  %v952_v45 = vpop.permute.xlu0 %951 }
  0x90   : > { %v959_v47 = vunpack.i.h.bf16 %v1183_v44  ;;  %v958_v48 = vunpack.i.l.bf16 %v1183_v44  ;;  %v954_v49 = vunpack.i.h.bf16 %v952_v45  ;;  %v953_v50 = vunpack.i.l.bf16 %v952_v45 }
  0x92   : > { %v283_v51 = vsel %vm281_vm0, %v953_v50, %v954_v49  ;;  %v253_v55 = vsel %vm251_vm2, %v958_v48, %v959_v47 }
  0x93   : > { %v967_v53 = vpop.permute.xlu1 %966  ;;  %v962_v54 = vpop.permute.xlu0 %961  ;;  %v287_v56 = vsel %vm1185_vm1, %v283_v51, 0.0  ;;  %v257_v61 = vsel %vm1185_vm1, %v253_v55, 0.0 }
  0x94   : > { %v969_v57 = vunpack.i.h.bf16 %v967_v53  ;;  %v968_v58 = vunpack.i.l.bf16 %v967_v53  ;;  %v964_v59 = vunpack.i.h.bf16 %v962_v54  ;;  %v963_v60 = vunpack.i.l.bf16 %v962_v54 }
  0x95   : > { %v349_v5 = vrot.slane %v287_v56, 4 }
  0x96   : > { %v270_v62 = vsel %vm268_vm4, %v963_v60, %v964_v59  ;;  %v343_v63 = vsel %vm341_vm5, %v968_v58, %v969_v57 }
  0x97   : > { %v977_v0 = vpop.permute.xlu1 %976  ;;  %v1205_v3 = vpop.permute.xlu0 %971  ;;  %v274_v4 = vsel %vm1192_vm3, %v270_v62, 0.0  ;;  %v376_v6 = vsel %vm374_vm6, %v257_v61, %v343_v63 }
  0x98   : > { %v378_v7 = vsel %vm374_vm6, %v274_v4, %v349_v5  ;;  %v974_v8 = vunpack.i.h.bf16 %v1205_v3  ;;  %v973_v10 = vunpack.i.l.bf16 %v1205_v3  ;;  %v979_v20 = vunpack.i.h.bf16 %v977_v0 }
  0x99   : > { %v515_v11 = vpack.c.bf16 %v378_v7, %v376_v6  ;;  %v978_v21 = vunpack.i.l.bf16 %v977_v0 }
  0x9a   : > { %v1216_v15 = vsel %vm300_vm7, %v973_v10, %v974_v8 }
  0x9b   : > { %v1213_v12 = vpop.permute.xlu1 %986  ;;  %v982_v13 = vpop.permute.xlu0 %981  ;;  %562 = vmatprep.subr.bf16.mxu0 %v515_v11  ;;  %v306_v24 = vsel %vm1192_vm3, %v1216_v15, 0.0 }
  0x9c   : > { %v989_v25 = vunpack.i.h.bf16 %v1213_v12  ;;  %v988_v28 = vunpack.i.l.bf16 %v1213_v12  ;;  %v984_v32 = vunpack.i.h.bf16 %v982_v13  ;;  %v983_v33 = vunpack.i.l.bf16 %v982_v13 }
  0x9f   : > { %v992_v16 = vpop.permute.xlu1 %991  ;;  %v997_v17 = vpop.permute.xlu0 %996 }
  0xa0   : > { %v999_v22 = vunpack.i.h.bf16 %v997_v17  ;;  %v998_v23 = vunpack.i.l.bf16 %v997_v17  ;;  %v993_v26 = vunpack.i.l.bf16 %v992_v16  ;;  %v994_v45 = vunpack.i.h.bf16 %v992_v16 }
  0xa2   : > { %v419_v29 = vsel %vm281_vm0, %v979_v20, %v999_v22  ;;  %v420_v30 = vsel %vm281_vm0, %v999_v22, %v978_v21  ;;  %v282_v31 = vsel %vm281_vm0, %v998_v23, %v953_v50  ;;  %v342_v47 = vsel %vm341_vm5, %v993_v26, %v968_v58 }
  0xa3   : > { %v1002_v34 = vpop.permute.xlu1 %1001  ;;  %v1007_v35 = vpop.permute.xlu0 %1006  ;;  %v286_v37 = vsel %vm1218_vm8, %v282_v31, 0.0  ;;  %v424_v38 = vsel %vm1185_vm1, %v420_v30, 0.0  ;;  %v423_v50 = vsel %vm1218_vm8, %v419_v29, 0.0  ;;  %v358_v30 = vrot.slane %v306_v24, 4 }
  0xa4   : > { %v1004_v39 = vunpack.i.h.bf16 %v1002_v34  ;;  %v1003_v41 = vunpack.i.l.bf16 %v1002_v34  ;;  %v1009_v42 = vunpack.i.h.bf16 %v1007_v35  ;;  %v1008_v43 = vunpack.i.l.bf16 %v1007_v35 }
  0xa5   : > { %v348_v49 = vrot.slane %v286_v37, 4  ;;  %v482_v44 = vrot.slane %v424_v38, 4  ;;  %vm781_vm0 = vcmp.lt.s32.totalorder %v223_v40, 256 }
  0xa6   : > { %v252_v51 = vsel %vm251_vm2, %v1003_v41, %v958_v48  ;;  %v269_v53 = vsel %vm268_vm4, %v1008_v43, %v963_v60  ;;  %v396_v54 = vsel %vm251_vm2, %v1004_v39, %v983_v33  ;;  %v408_v55 = vsel %vm268_vm4, %v1009_v42, %v988_v28 }
  0xa7   : > { %v1022_v56 = vpop.permute.xlu1 %1021  ;;  %v1012_v57 = vpop.permute.xlu0 %1011  ;;  %v256_v59 = vsel %vm1218_vm8, %v252_v51, 0.0  ;;  %v273_v58 = vsel %vm1226_vm9, %v269_v53, 0.0  ;;  %v412_v61 = vsel %vm1192_vm3, %v408_v55, 0.0  ;;  %v481_v60 = vrot.slane %v423_v50, 4 }
  0xa8   : > { %v1023_v62 = vunpack.i.l.bf16 %v1022_v56  ;;  %v1014_v48 = vunpack.i.h.bf16 %v1012_v57  ;;  %v1013_v63 = vunpack.i.l.bf16 %v1012_v57  ;;  %v375_v0 = vsel %vm374_vm6, %v256_v59, %v342_v47 }
  0xa9   : > { %v377_v3 = vsel %vm374_vm6, %v273_v58, %v348_v49  ;;  %v400_v4 = vsel %vm1185_vm1, %v396_v54, 0.0  ;;  %v395_v5 = vsel %vm251_vm2, %v984_v32, %v1004_v39  ;;  %v1024_v6 = vunpack.i.h.bf16 %v1022_v56 }
  0xaa   : > { %v514_v7 = vpack.c.bf16 %v377_v3, %v375_v0  ;;  %v476_v8 = vsel %vm341_vm5, %v994_v45, %v1013_v63  ;;  %v509_v11 = vsel %vm374_vm6, %v412_v61, %v482_v44  ;;  %v301_v12 = vsel %vm300_vm7, %v1023_v62, %v973_v10 }
  0xab   : > { %v1027_v13 = vpop.permute.xlu1 %1026  ;;  %v1017_v14 = vpop.permute.xlu0 %1016  ;;  %v507_v15 = vsel %vm374_vm6, %v400_v4, %v476_v8  ;;  %v407_v16 = vsel %vm268_vm4, %v989_v25, %v1009_v42  ;;  %v475_v17 = vsel %vm341_vm5, %v1014_v48, %v994_v45  ;;  %v399_v23 = vsel %vm1218_vm8, %v395_v5, 0.0 }
  0xac   : > { %v1029_v20 = vunpack.i.h.bf16 %v1027_v13  ;;  %v1028_v21 = vunpack.i.l.bf16 %v1027_v13  ;;  %v1019_v22 = vunpack.i.h.bf16 %v1017_v14  ;;  %563 = vmatpush1.bf16.msra.mxu0 %v514_v7  ;;  %v1018_v26 = vunpack.i.l.bf16 %v1017_v14 }
  0xad   : > { %v517_v28 = vpack.c.bf16 %v509_v11, %v507_v15  ;;  %v411_v10 = vsel %vm1226_vm9, %v407_v16, 0.0  ;;  %v506_v29 = vsel %vm374_vm6, %v399_v23, %v475_v17  ;;  %v305_v31 = vsel %vm1226_vm9, %v301_v12, 0.0 }
  0xae   : > { %v508_v25 = vsel %vm374_vm6, %v411_v10, %v481_v60  ;;  %v315_v32 = vsel %vm313_vm10, %v1028_v21, %v1029_v20  ;;  %v437_v33 = vsel %vm300_vm7, %v1019_v22, %v1024_v6  ;;  %v438_v38 = vsel %vm300_vm7, %v1024_v6, %v1018_v26 }
  0xaf   : > { %605 = vmatprep.subr.bf16.mxu1 %v517_v28  ;;  %v1037_v34 = vpop.permute.xlu1 %1036  ;;  %v1032_v35 = vpop.permute.xlu0 %1031  ;;  %v516_v37 = vpack.c.bf16 %v508_v25, %v506_v29  ;;  %v357_v24 = vrot.slane %v305_v31, 4  ;;  %v441_v43 = vsel %vm1226_vm9, %v437_v33, 0.0  ;;  %v319_v47 = vsel %vm1185_vm1, %v315_v32, 0.0 }
  0xb0   : > { %v1039_v39 = vunpack.i.h.bf16 %v1037_v34  ;;  %v1038_v41 = vunpack.i.l.bf16 %v1037_v34  ;;  %v1033_v42 = vunpack.i.l.bf16 %v1032_v35  ;;  %v442_v49 = vsel %vm1192_vm3, %v438_v38, 0.0 }
  0xb1   : > { %606 = vmatpush1.bf16.msra.mxu1 %v516_v37  ;;  %v380_v54 = vsel %vm374_vm6, %v1149_v9, %v358_v30  ;;  %v1034_v56 = vunpack.i.h.bf16 %v1032_v35  ;;  %v490_v61 = vrot.slane %v441_v43, 4  ;;  %v379_v60 = vsel %vm374_vm6, %v1141_v1, %v357_v24 }
  0xb2   : > { %v371_v45 = vsel %vm369_vm11, %v1038_v41, %v1039_v39  ;;  %v314_v50 = vsel %vm313_vm10, %v1033_v42, %v1028_v21  ;;  %v491_v9 = vrot.slane %v442_v49, 4 }
  0xb3   : > { %v1047_v51 = vpop.permute.xlu1 %1046  ;;  %v1042_v53 = vpop.permute.xlu0 %1041  ;;  %v382_v55 = vsel %vm374_vm6, %v319_v47, %v371_v45  ;;  %v318_v63 = vsel %vm1218_vm8, %v314_v50, 0.0  ;;  %v510_v1 = vsel %vm374_vm6, %v1144_v2, %v490_v61 }
  0xb4   : > { %v1048_v57 = vunpack.i.l.bf16 %v1047_v51  ;;  %v1044_v59 = vunpack.i.h.bf16 %v1042_v53  ;;  %v1043_v58 = vunpack.i.l.bf16 %v1042_v53  ;;  %v519_v44 = vpack.c.bf16 %v382_v55, %v380_v54 }
  0xb5   : > { %v1049_v0 = vunpack.i.h.bf16 %v1047_v51  ;;  %v511_v23 = vsel %vm374_vm6, %v1154_v19, %v491_v9 }
  0xb6   : > { %v370_v62 = vsel %vm369_vm11, %v1048_v57, %v1038_v41  ;;  %v450_v48 = vsel %vm313_vm10, %v1034_v56, %v1043_v58  ;;  %v449_v3 = vsel %vm313_vm10, %v1044_v59, %v1034_v56  ;;  %564 = vmatprep.subr.bf16.mxu0 %v519_v44 }
  0xb7   : > { %v1057_v4 = vpop.permute.xlu1 %1056  ;;  %v1052_v5 = vpop.permute.xlu0 %1051  ;;  %v381_v6 = vsel %vm374_vm6, %v318_v63, %v370_v62  ;;  %v454_v14 = vsel %vm1185_vm1, %v450_v48, 0.0  ;;  %v453_v17 = vsel %vm1218_vm8, %v449_v3, 0.0 }
  0xb8   : > { %v1059_v7 = vunpack.i.h.bf16 %v1057_v4  ;;  %v1058_v8 = vunpack.i.l.bf16 %v1057_v4  ;;  %v1054_v11 = vunpack.i.h.bf16 %v1052_v5  ;;  %v1053_v12 = vunpack.i.l.bf16 %v1052_v5 }
  0xb9   : > { %v518_v13 = vpack.c.bf16 %v381_v6, %v379_v60 }
  0xba   : > { %v502_v15 = vsel %vm369_vm11, %v1054_v11, %v1049_v0  ;;  %v503_v16 = vsel %vm369_vm11, %v1049_v0, %v1053_v12  ;;  %v327_v20 = vsel %vm326_vm12, %v1058_v8, %v1059_v7  ;;  %v656_v11 = vld [vmem:[%s1348_s1 + $0x8] sm:$0x1]  ;;  %v1101_v12 = vmov 1966171168  }
  0xbb   : > { %565 = vmatpush1.bf16.msra.mxu0 %v518_v13  ;;  %v1067_v21 = vpop.permute.xlu1 %1066  ;;  %v1062_v22 = vpop.permute.xlu0 %1061  ;;  %v513_v46 = vsel %vm374_vm6, %v454_v14, %v503_v16  ;;  %v512_v26 = vsel %vm374_vm6, %v453_v17, %v502_v15  ;;  %v331_v2 = vsel %vm1226_vm9, %v327_v20, 0.0  ;;  %v765_v13 = vunpack.c.l.s4 %v1101_v12 }
  0xbc   : > { %v1069_v28 = vunpack.i.h.bf16 %v1067_v21  ;;  %v1068_v10 = vunpack.i.l.bf16 %v1067_v21  ;;  %v1064_v29 = vunpack.i.h.bf16 %v1062_v22  ;;  %v1063_v18 = vunpack.i.l.bf16 %v1062_v22 }
  0xbd   : > { %v521_v30 = vpack.c.bf16 %v513_v46, %v511_v23  ;;  %v520_v25 = vpack.c.bf16 %v512_v26, %v510_v1  ;;  %v522_v33 = vpack.c.bf16 %v331_v2, %v331_v2  ;;  %v766_v14 = vunpack.c.0.s8 %v765_v13 }
  0xbe   : > { %v462_v31 = vsel %vm326_vm12, %v1068_v10, %v1069_v28  ;;  %v328_v32 = vsel %vm326_vm12, %v1059_v7, %v1063_v18  ;;  %v461_v19 = vsel %vm326_vm12, %v1064_v29, %v1068_v10  ;;  %v768_v1 = vshrl.u32 %v223_v40, 7 }
  0xbf   : > { %v466_v34 = vsel %vm1192_vm3, %v462_v31, 0.0  ;;  %v332_v35 = vsel %vm1192_vm3, %v328_v32, 0.0  ;;  %607 = vmatprep.subr.bf16.mxu1 %v521_v30  ;;  %v465_v37 = vsel %vm1226_vm9, %v461_v19, 0.0  ;;  %v551_v42 = vsel %vm549_vm13, %v522_v33, 0 }
  0xc0   : > { %608 = vmatpush1.bf16.msra.mxu1 %v520_v25  ;;  %v523_v38 = vpack.c.bf16 %v332_v35, %v332_v35  ;;  %v525_v39 = vpack.c.bf16 %v466_v34, %v466_v34  ;;  %v524_v41 = vpack.c.bf16 %v465_v37, %v465_v37  ;;  %v769_v22 = vsub.s32 %v766_v14, %v768_v1 }
  0xc2   : > { %916 = vmatprep.subr.msk.bf16.mxu0 %vm549_vm13, %v523_v38  ;;  %918 = vmatprep.subr.msk.bf16.mxu1 %vm549_vm13, %v525_v39  ;;  %v557_v24 = vsel %vm549_vm13, %v524_v41, 0 }
  0xc3   : > { %567 = vmatpush1.bf16.msra.mxu0 %v551_v42 }
  0xc4   : > { %610 = vmatpush1.bf16.msra.mxu1 %v557_v24 }
  0xc6   : > { %917 = vmatmul.mubr.msk.bf16.vlgmr.msra.gmra.mrb[0].mxu0 %vm545_vm14, %v1082_v52 }
  0xc7   : > { %919 = vmatmul.mubr.msk.bf16.vlgmr.msra.gmra.mrb[0].mxu1 %vm545_vm14, %v1082_v52  ;;  %711 = vmatprep.mubr.bf16.mxu0 %v1100_v36 }
  0xc8   : > { %752 = vmatprep.mubr.bf16.mxu1 %v1100_v36 }
  0xcc   : > { %v661_v27 = vpop.permute.xlu1 %660  ;;  %v533_v43 = vpop.permute.xlu0 %532 }
  0xd0   : > { %v538_v47 = vpop.permute.xlu1 %537 }
 0x199   : > { %v596_v45 = vpop.f32.mrb[0].mxu0 }
 0x19a   : > { %v597_v49 = vadd.f32 %v596_v45, %v533_v43  ;;  %v639_v50 = vpop.f32.mrb[0].mxu1  ;;  %v598_v51 = vpop.f32.mrb[1].mxu0 }
 0x19b   : > { %v640_v53 = vadd.f32 %v639_v50, %v533_v43  ;;  %v599_v54 = vadd.f32 %v598_v51, %v533_v43  ;;  %v641_v55 = vpop.f32.mrb[1].mxu1  ;;  %v600_v56 = vpop.f32.mrb[2].mxu0 }
 0x19c   : > { %v648_v57 = vmax.f32 %v597_v49, 0.0  ;;  %v642_v59 = vadd.f32 %v641_v55, %v533_v43  ;;  %v601_v58 = vadd.f32 %v600_v56, %v538_v47  ;;  %v643_v36 = vpop.f32.mrb[2].mxu1  ;;  %v602_v61 = vpop.f32.mrb[3].mxu0 }
 0x19d   : > { %v650_v44 = vmax.f32 %v640_v53, 0.0  ;;  %v649_v62 = vmax.f32 %v599_v54, 0.0  ;;  %v644_v48 = vadd.f32 %v643_v36, %v538_v47  ;;  %v603_v63 = vadd.f32 %v602_v61, %v538_v47  ;;  %v645_v60 = vpop.f32.mrb[3].mxu1 }
 0x19e   : > { %v652_v9 = vpack.c.bf16 %v648_v57, %v648_v57  ;;  %v651_v0 = vmax.f32 %v642_v59, 0.0  ;;  %804 = vst [vmem:[%s218_s16] sm:$0xff] %v601_v58  ;;  %v646_v3 = vadd.f32 %v645_v60, %v538_v47 }
 0x19f   : > { %v654_v4 = vpack.c.bf16 %v650_v44, %v650_v44  ;;  %v653_v5 = vpack.c.bf16 %v649_v62, %v649_v62  ;;  %925 = vst [vmem:[%s218_s16 + $0x10] sm:$0xff] %v644_v48  ;;  %805 = vst [vmem:[%s218_s16 + $0x8] sm:$0xff] %v603_v63 }
 0x1a0   : > { %v655_v6 = vpack.c.bf16 %v651_v0, %v651_v0  ;;  %926 = vst [vmem:[%s218_s16 + $0x18] sm:$0xff] %v646_v3  ;;  %v668_v7 = vsel %vm549_vm13, %v652_v9, 0 }
 0x1a1   : > { %920 = vmatprep.subr.msk.bf16.mxu0 %vm549_vm13, %v653_v5  ;;  %v674_v8 = vsel %vm549_vm13, %v654_v4, 0 }
 0x1a2   : > { %922 = vmatprep.subr.msk.bf16.mxu1 %vm549_vm13, %v655_v6  ;;  %680 = vmatpush1.bf16.msra.mxu0 %v668_v7 }
 0x1a3   : > { %721 = vmatpush1.bf16.msra.mxu1 %v674_v8 }
 0x1a5   : > { %921 = vmatmul.mubr.msk.bf16.vlgmr.msra.gmra.mrb[4].mxu0 %vm663_vm15, %v656_v11 }
 0x1a6   : > { %923 = vmatmul.mubr.msk.bf16.vlgmr.msra.gmra.mrb[4].mxu1 %vm663_vm15, %v656_v11 }
 0x278   : > { %v713_v15 = vpop.f32.mrb[4].mxu0 }
 0x279   : > { %v714_v16 = vadd.f32 %v713_v15, %v661_v27  ;;  %v715_v17 = vpop.f32.mrb[5].mxu0  ;;  %v754_v20 = vpop.f32.mrb[4].mxu1 }
 0x27a   : > { %v716_v21 = vadd.f32 %v715_v17, %v661_v27  ;;  %v755_v23 = vadd.f32 %v754_v20, %v661_v27  ;;  %v717_v46 = vpop.f32.mrb[6].mxu0  ;;  %v756_v26 = vpop.f32.mrb[5].mxu1 }
 0x27b   : > { %v757_v2 = vadd.f32 %v756_v26, %v661_v27  ;;  %v718_v28 = vpop.f32.mrb[7].mxu0  ;;  %v758_v10 = vpop.f32.mrb[6].mxu1 }
 0x27c   : > { %v763_v29 = vcombine.low %v714_v16, %v716_v21  ;;  %v759_v18 = vpop.f32.mrb[7].mxu1 }
 0x27d   : > { %v786_v30 = vcombine.low %v755_v23, %v757_v2 }
 0x27e   : > { %v770_v25 = vrot.slane %v763_v29, %v769_v22 }
 0x27f   : > { %v793_v31 = vrot.slane %v786_v30, %v769_v22 }
 0x280   : > { %v777_v32 = vrot.slane %v770_v25, %v769_v22 }
 0x281   : > { %v800_v33 = vrot.slane %v793_v31, %v769_v22 }
 0x282   : > { %783 = vst.msk [vmem:[%s211_s23] sm:$0x3] %vm781_vm0, %v777_v32 }
 0x283   : > { %924 = vst.msk [vmem:[%s211_s23 + $0x2] sm:$0x3] %vm781_vm0, %v800_v33 }
 0x284 PF: > { %s15_s15 = sadd.s32 1, %s1089_s15  }
 0x285   : > { %p12_p4 = scmp.ge.s32.totalorder %s15_s15, 4  }
 0x287   :  { %14 = sbr.rel (!%p12_p4) target bundleno = 1 (0x1), region = 77 }

</bundles_post_ra>
